<compile_context>
chip_gen: v6e
topology: v6e:2x2x1
jax: 0.10.0
libtpu: 0.0.40
codegen_flags: <defaults>
</compile_context>

<pallas_src>
import math
import numpy as np

import jax
import jax.numpy as jnp
from jax.experimental import pallas as pl
from jax.experimental.pallas import tpu as pltpu


LANE = 128      # channel padding target (TPU lane width)
SUBLANE = 8     # temporal padding target (TPU sublane count)


# ----------------------------------------------------------------------------
# Fused Pallas kernel: all ConvBlocks + global max pool, one batch element/step.
# ----------------------------------------------------------------------------
def _make_fused_kernel(n_layers):
    def kernel(x_ref, *refs):
        # refs = [G_0, W_0, b_0, ..., G_{L-1}, W_{L-1}, b_{L-1}, o_ref]
        o_ref = refs[-1]
        act = x_ref[0]                                       # (T0_pad, Cp) f32, NWC
        for l in range(n_layers):                            # static unroll
            g_ref = refs[3 * l + 0]                          # (K, T_out_pad, T_in_pad) 0/1
            w_ref = refs[3 * l + 1]                          # (K, Cp, Cp)
            b_ref = refs[3 * l + 2]                          # (1, Cp)
            n_taps = g_ref.shape[0]
            y = None
            for k in range(n_taps):                          # static unroll (K small)
                # reflection-pad + stride + tap-k gather expressed as an MXU matmul
                sel = jnp.dot(g_ref[k], act,
                              preferred_element_type=jnp.float32)    # (T_out_pad, Cp)
                part = jnp.dot(sel, w_ref[k],
                               preferred_element_type=jnp.float32)   # (T_out_pad, Cp)
                y = part if y is None else y + part
            y = y + b_ref[...]                               # bias broadcast over T
            act = jnp.where(y > 0.0, y, 0.2 * y)             # LeakyReLU(0.2)
        # fused global max-pool over the full temporal axis (pad rows are
        # duplicates of the last valid row, so the max is unaffected).
        o_ref[...] = jnp.max(act, axis=0, keepdims=True)[None]       # (1, 1, Cp)
    return kernel


# ----------------------------------------------------------------------------
# Wrapper: builds padded weights / selection matrices and calls the fused kernel.
# ----------------------------------------------------------------------------
def _round_up(v, m):
    return ((v + m - 1) // m) * m


def _reflect(i, n):
    """PyTorch ReflectionPad1d index mapping (no edge repeat)."""
    if i < 0:
        return -i
    if i >= n:
        return 2 * (n - 1) - i
    return i


def _selection_matrices(t_in_real, t_in_pad, kernel_size, stride):
    """0/1 matrices G (K, T_out_pad, T_in_pad): G[k] @ A == tap-k of the
    reflection-padded, strided window extraction. Rows >= T_out_real duplicate
    the last valid output position (harmless for conv + global max)."""
    pad_l = (kernel_size - 1) // 2
    t_out_real = (t_in_real - 1) // stride + 1
    t_out_pad = _round_up(t_out_real, SUBLANE)
    g = np.zeros((kernel_size, t_out_pad, t_in_pad), np.float32)
    for k in range(kernel_size):
        for t in range(t_out_pad):
            tt = min(t, t_out_real - 1)
            g[k, t, _reflect(tt * stride + k - pad_l, t_in_real)] = 1.0
    return g, t_out_real, t_out_pad


def encoder_style3d_forward(params, x, stride):
    """params: list of (w (C_out, C_in, K), b (C_out,)).  x: (N, C, T) NCW."""
    N, C0, T = x.shape
    n_layers = len(params)
    c_max = max([C0] + [w.shape[0] for (w, _) in params])
    c_pad = max(LANE, _round_up(c_max, LANE))
    t_pad = _round_up(T, SUBLANE)

    # NWC layout; channels zero-padded to the lane width. Padded channels stay
    # exactly zero through every layer (padded weight rows/cols and bias are 0).
    x_nwc = jnp.transpose(x, (0, 2, 1))                          # (N, T, C0)
    x_nwc = jnp.pad(x_nwc, ((0, 0), (0, t_pad - T), (0, c_pad - C0)))

    inputs = [x_nwc]
    in_specs = [pl.BlockSpec((1, t_pad, c_pad), lambda n: (n, 0, 0))]

    t_real = T
    for (w, b) in params:
        C_out, C_in, K = w.shape
        g, t_real_out, t_pad_out = _selection_matrices(t_real, t_pad, K, stride)

        w_kio = jnp.transpose(w, (2, 1, 0))                      # (K, C_in, C_out)
        w_padded = jnp.zeros((K, c_pad, c_pad), jnp.float32)
        w_padded = w_padded.at[:, :C_in, :C_out].set(w_kio)
        b_padded = jnp.zeros((1, c_pad), jnp.float32).at[0, :C_out].set(b)

        inputs += [jnp.asarray(g), w_padded, b_padded]
        in_specs += [
            pl.BlockSpec((K, t_pad_out, t_pad), lambda n: (0, 0, 0)),  # resident
            pl.BlockSpec((K, c_pad, c_pad), lambda n: (0, 0, 0)),      # resident
            pl.BlockSpec((1, c_pad), lambda n: (0, 0)),                # resident
        ]
        t_real, t_pad = t_real_out, t_pad_out

    out = pl.pallas_call(
        _make_fused_kernel(n_layers),
        out_shape=jax.ShapeDtypeStruct((N, 1, c_pad), jnp.float32),
        grid=(N,),
        in_specs=in_specs,
        out_specs=pl.BlockSpec((1, 1, c_pad), lambda n: (n, 0, 0)),
        compiler_params=pltpu.CompilerParams(
            dimension_semantics=("parallel",)),   # shard batch across TCs on v7x
    )(*inputs)

    C_last = params[-1][0].shape[0]
    return out[:, 0, :C_last][..., None]                         # (N, C_last, 1)


# ----------------------------------------------------------------------------
# Parameter init (PyTorch Conv1d-style uniform) and pure-JAX reference.
# ----------------------------------------------------------------------------
def init_encoder_params(key, channels, kernel_size):
    params = []
    for i in range(len(channels) - 1):
        key, kw, kb = jax.random.split(key, 3)
        fan_in = channels[i] * kernel_size
        bound = 1.0 / math.sqrt(fan_in)
        w = jax.random.uniform(
            kw, (channels[i + 1], channels[i], kernel_size), jnp.float32, -bound, bound)
        b = jax.random.uniform(kb, (channels[i + 1],), jnp.float32, -bound, bound)
        params.append((w, b))
    return params


def _im2col_ref(x, kernel_size, stride):
    N, C_in, T = x.shape
    K = kernel_size
    pad_l = (K - 1) // 2
    pad_r = K - 1 - pad_l
    x_pad = jnp.pad(x, ((0, 0), (0, 0), (pad_l, pad_r)), mode="reflect")
    T_out = (T + pad_l + pad_r - K) // stride + 1
    idx = (jnp.arange(T_out) * stride)[:, None] + jnp.arange(K)[None, :]
    patches = x_pad[:, :, idx]                                   # (N, C_in, T_out, K)
    patches = jnp.transpose(patches, (0, 2, 1, 3)).reshape(N * T_out, C_in * K)
    return patches, N, T_out


def encoder_style3d_ref(params, x, stride):
    for (w, b) in params:
        C_out, C_in, K = w.shape
        patches, N, T_out = _im2col_ref(x, K, stride)
        y = jnp.dot(patches, w.reshape(C_out, C_in * K).T,
                    preferred_element_type=jnp.float32) + b[None, :]
        y = jnp.where(y > 0.0, y, 0.2 * y)
        x = y.reshape(N, T_out, C_out).transpose(0, 2, 1)
    return jnp.max(x, axis=-1, keepdims=True)


if __name__ == "__main__":
    # Synthetic config (small shapes):
    #   config.style_channel_3d = 4, config.enc_cl_channels = [4, 8, 16, 32]
    #   config.enc_cl_kernel_size = 3, config.enc_cl_stride = 2, config.enc_cl_down_n = 3
    channels = [4, 8, 16, 32]
    kernel_size = 3
    stride = 2
    batch, seq = 2, 16

    root = jax.random.PRNGKey(0)
    k_params, k_x = jax.random.split(root)
    params = init_encoder_params(k_params, channels, kernel_size)
    x = jax.random.normal(k_x, (batch, channels[0], seq), jnp.float32)

    fwd = jax.jit(lambda p, xx: encoder_style3d_forward(p, xx, stride))
    out = jax.block_until_ready(fwd(params, x))

    assert out.shape == (batch, channels[-1], 1), out.shape
    ref = jax.block_until_ready(encoder_style3d_ref(params, x, stride))
    assert jnp.allclose(out, ref, atol=1e-4, rtol=1e-3), float(jnp.max(jnp.abs(out - ref)))

    print("KERNEL_OK")
</pallas_src>

<mosaic_0001>
module attributes {stable_mosaic.version = 11 : i64} {
  func.func @kernel(%arg0: i32, %arg1: memref<1x16x128xf32, #tpu.memory_space<vmem>>, %arg2: memref<3x8x16xf32, #tpu.memory_space<vmem>>, %arg3: memref<3x128x128xf32, #tpu.memory_space<vmem>>, %arg4: memref<1x128xf32, #tpu.memory_space<vmem>>, %arg5: memref<3x8x8xf32, #tpu.memory_space<vmem>>, %arg6: memref<3x128x128xf32, #tpu.memory_space<vmem>>, %arg7: memref<1x128xf32, #tpu.memory_space<vmem>>, %arg8: memref<3x8x8xf32, #tpu.memory_space<vmem>>, %arg9: memref<3x128x128xf32, #tpu.memory_space<vmem>>, %arg10: memref<1x128xf32, #tpu.memory_space<vmem>>, %arg11: memref<1x1x128xf32, #tpu.memory_space<vmem>>) attributes {dimension_semantics = [#tpu.dimension_semantics<parallel>], iteration_bounds = array<i64: 2>, scalar_prefetch = 0 : i64, scratch_operands = 0 : i64, tpu.core_type = #tpu.core_type<tc>, window_params = [{transform_indices = @transform_0, window_bounds = array<i64: 1, 16, 128>}, {pipeline_mode = #tpu.pipeline_mode<synchronous>, transform_indices = @transform_1, window_bounds = array<i64: 3, 8, 16>}, {pipeline_mode = #tpu.pipeline_mode<synchronous>, transform_indices = @transform_2, window_bounds = array<i64: 3, 128, 128>}, {pipeline_mode = #tpu.pipeline_mode<synchronous>, transform_indices = @transform_3, window_bounds = array<i64: 1, 128>}, {pipeline_mode = #tpu.pipeline_mode<synchronous>, transform_indices = @transform_4, window_bounds = array<i64: 3, 8, 8>}, {pipeline_mode = #tpu.pipeline_mode<synchronous>, transform_indices = @transform_5, window_bounds = array<i64: 3, 128, 128>}, {pipeline_mode = #tpu.pipeline_mode<synchronous>, transform_indices = @transform_6, window_bounds = array<i64: 1, 128>}, {pipeline_mode = #tpu.pipeline_mode<synchronous>, transform_indices = @transform_7, window_bounds = array<i64: 3, 8, 8>}, {pipeline_mode = #tpu.pipeline_mode<synchronous>, transform_indices = @transform_8, window_bounds = array<i64: 3, 128, 128>}, {pipeline_mode = #tpu.pipeline_mode<synchronous>, transform_indices = @transform_9, window_bounds = array<i64: 1, 128>}, {transform_indices = @transform_10, window_bounds = array<i64: 1, 1, 128>}]} {
    %c0 = arith.constant 0 : index
    %c0_0 = arith.constant 0 : index
    %c0_1 = arith.constant 0 : index
    %0 = vector.load %arg1[%c0, %c0_0, %c0_1] : memref<1x16x128xf32, #tpu.memory_space<vmem>>, vector<1x16x128xf32>
    %1 = vector.shape_cast %0 : vector<1x16x128xf32> to vector<16x128xf32>
    %c0_2 = arith.constant 0 : index
    %c0_3 = arith.constant 0 : index
    %c0_4 = arith.constant 0 : index
    %2 = vector.load %arg2[%c0_2, %c0_3, %c0_4] : memref<3x8x16xf32, #tpu.memory_space<vmem>>, vector<1x8x16xf32>
    %3 = vector.shape_cast %2 : vector<1x8x16xf32> to vector<8x16xf32>
    %cst = arith.constant dense<0.000000e+00> : vector<8x128xf32>
    %4 = tpu.matmul %3, %1, %cst {dimension_numbers = #tpu.dot_dimension_numbers<[1], [0], [0], [1], [0, 0, 1, 1], [], []>} : vector<8x16xf32>, vector<16x128xf32>, vector<8x128xf32> -> vector<8x128xf32>
    %c0_5 = arith.constant 0 : index
    %c0_6 = arith.constant 0 : index
    %c0_7 = arith.constant 0 : index
    %5 = vector.load %arg3[%c0_5, %c0_6, %c0_7] : memref<3x128x128xf32, #tpu.memory_space<vmem>>, vector<1x128x128xf32>
    %6 = vector.shape_cast %5 : vector<1x128x128xf32> to vector<128x128xf32>
    %cst_8 = arith.constant dense<0.000000e+00> : vector<8x128xf32>
    %7 = tpu.matmul %4, %6, %cst_8 {dimension_numbers = #tpu.dot_dimension_numbers<[1], [0], [0], [1], [0, 0, 1, 1], [], []>} : vector<8x128xf32>, vector<128x128xf32>, vector<8x128xf32> -> vector<8x128xf32>
    %c1 = arith.constant 1 : index
    %c0_9 = arith.constant 0 : index
    %c0_10 = arith.constant 0 : index
    %8 = vector.load %arg2[%c1, %c0_9, %c0_10] : memref<3x8x16xf32, #tpu.memory_space<vmem>>, vector<1x8x16xf32>
    %9 = vector.shape_cast %8 : vector<1x8x16xf32> to vector<8x16xf32>
    %cst_11 = arith.constant dense<0.000000e+00> : vector<8x128xf32>
    %10 = tpu.matmul %9, %1, %cst_11 {dimension_numbers = #tpu.dot_dimension_numbers<[1], [0], [0], [1], [0, 0, 1, 1], [], []>} : vector<8x16xf32>, vector<16x128xf32>, vector<8x128xf32> -> vector<8x128xf32>
    %c1_12 = arith.constant 1 : index
    %c0_13 = arith.constant 0 : index
    %c0_14 = arith.constant 0 : index
    %11 = vector.load %arg3[%c1_12, %c0_13, %c0_14] : memref<3x128x128xf32, #tpu.memory_space<vmem>>, vector<1x128x128xf32>
    %12 = vector.shape_cast %11 : vector<1x128x128xf32> to vector<128x128xf32>
    %cst_15 = arith.constant dense<0.000000e+00> : vector<8x128xf32>
    %13 = tpu.matmul %10, %12, %cst_15 {dimension_numbers = #tpu.dot_dimension_numbers<[1], [0], [0], [1], [0, 0, 1, 1], [], []>} : vector<8x128xf32>, vector<128x128xf32>, vector<8x128xf32> -> vector<8x128xf32>
    %14 = arith.addf %7, %13 : vector<8x128xf32>
    %c2 = arith.constant 2 : index
    %c0_16 = arith.constant 0 : index
    %c0_17 = arith.constant 0 : index
    %15 = vector.load %arg2[%c2, %c0_16, %c0_17] : memref<3x8x16xf32, #tpu.memory_space<vmem>>, vector<1x8x16xf32>
    %16 = vector.shape_cast %15 : vector<1x8x16xf32> to vector<8x16xf32>
    %cst_18 = arith.constant dense<0.000000e+00> : vector<8x128xf32>
    %17 = tpu.matmul %16, %1, %cst_18 {dimension_numbers = #tpu.dot_dimension_numbers<[1], [0], [0], [1], [0, 0, 1, 1], [], []>} : vector<8x16xf32>, vector<16x128xf32>, vector<8x128xf32> -> vector<8x128xf32>
    %c2_19 = arith.constant 2 : index
    %c0_20 = arith.constant 0 : index
    %c0_21 = arith.constant 0 : index
    %18 = vector.load %arg3[%c2_19, %c0_20, %c0_21] : memref<3x128x128xf32, #tpu.memory_space<vmem>>, vector<1x128x128xf32>
    %19 = vector.shape_cast %18 : vector<1x128x128xf32> to vector<128x128xf32>
    %cst_22 = arith.constant dense<0.000000e+00> : vector<8x128xf32>
    %20 = tpu.matmul %17, %19, %cst_22 {dimension_numbers = #tpu.dot_dimension_numbers<[1], [0], [0], [1], [0, 0, 1, 1], [], []>} : vector<8x128xf32>, vector<128x128xf32>, vector<8x128xf32> -> vector<8x128xf32>
    %21 = arith.addf %14, %20 : vector<8x128xf32>
    %c0_23 = arith.constant 0 : index
    %c0_24 = arith.constant 0 : index
    %22 = vector.load %arg4[%c0_23, %c0_24] : memref<1x128xf32, #tpu.memory_space<vmem>>, vector<1x128xf32>
    %23 = vector.broadcast %22 : vector<1x128xf32> to vector<8x128xf32>
    %24 = arith.addf %21, %23 : vector<8x128xf32>
    %cst_25 = arith.constant 0.000000e+00 : f32
    %25 = vector.broadcast %cst_25 : f32 to vector<8x128xf32>
    %26 = arith.cmpf ogt, %24, %25 : vector<8x128xf32>
    %cst_26 = arith.constant 2.000000e-01 : f32
    %27 = vector.broadcast %cst_26 : f32 to vector<8x128xf32>
    %28 = arith.mulf %27, %24 : vector<8x128xf32>
    %29 = arith.select %26, %24, %28 : vector<8x128xi1>, vector<8x128xf32>
    %c0_27 = arith.constant 0 : index
    %c0_28 = arith.constant 0 : index
    %c0_29 = arith.constant 0 : index
    %30 = vector.load %arg5[%c0_27, %c0_28, %c0_29] : memref<3x8x8xf32, #tpu.memory_space<vmem>>, vector<1x8x8xf32>
    %31 = vector.shape_cast %30 : vector<1x8x8xf32> to vector<8x8xf32>
    %cst_30 = arith.constant dense<0.000000e+00> : vector<8x128xf32>
    %32 = tpu.matmul %31, %29, %cst_30 {dimension_numbers = #tpu.dot_dimension_numbers<[1], [0], [0], [1], [0, 0, 1, 1], [], []>} : vector<8x8xf32>, vector<8x128xf32>, vector<8x128xf32> -> vector<8x128xf32>
    %c0_31 = arith.constant 0 : index
    %c0_32 = arith.constant 0 : index
    %c0_33 = arith.constant 0 : index
    %33 = vector.load %arg6[%c0_31, %c0_32, %c0_33] : memref<3x128x128xf32, #tpu.memory_space<vmem>>, vector<1x128x128xf32>
    %34 = vector.shape_cast %33 : vector<1x128x128xf32> to vector<128x128xf32>
    %cst_34 = arith.constant dense<0.000000e+00> : vector<8x128xf32>
    %35 = tpu.matmul %32, %34, %cst_34 {dimension_numbers = #tpu.dot_dimension_numbers<[1], [0], [0], [1], [0, 0, 1, 1], [], []>} : vector<8x128xf32>, vector<128x128xf32>, vector<8x128xf32> -> vector<8x128xf32>
    %c1_35 = arith.constant 1 : index
    %c0_36 = arith.constant 0 : index
    %c0_37 = arith.constant 0 : index
    %36 = vector.load %arg5[%c1_35, %c0_36, %c0_37] : memref<3x8x8xf32, #tpu.memory_space<vmem>>, vector<1x8x8xf32>
    %37 = vector.shape_cast %36 : vector<1x8x8xf32> to vector<8x8xf32>
    %cst_38 = arith.constant dense<0.000000e+00> : vector<8x128xf32>
    %38 = tpu.matmul %37, %29, %cst_38 {dimension_numbers = #tpu.dot_dimension_numbers<[1], [0], [0], [1], [0, 0, 1, 1], [], []>} : vector<8x8xf32>, vector<8x128xf32>, vector<8x128xf32> -> vector<8x128xf32>
    %c1_39 = arith.constant 1 : index
    %c0_40 = arith.constant 0 : index
    %c0_41 = arith.constant 0 : index
    %39 = vector.load %arg6[%c1_39, %c0_40, %c0_41] : memref<3x128x128xf32, #tpu.memory_space<vmem>>, vector<1x128x128xf32>
    %40 = vector.shape_cast %39 : vector<1x128x128xf32> to vector<128x128xf32>
    %cst_42 = arith.constant dense<0.000000e+00> : vector<8x128xf32>
    %41 = tpu.matmul %38, %40, %cst_42 {dimension_numbers = #tpu.dot_dimension_numbers<[1], [0], [0], [1], [0, 0, 1, 1], [], []>} : vector<8x128xf32>, vector<128x128xf32>, vector<8x128xf32> -> vector<8x128xf32>
    %42 = arith.addf %35, %41 : vector<8x128xf32>
    %c2_43 = arith.constant 2 : index
    %c0_44 = arith.constant 0 : index
    %c0_45 = arith.constant 0 : index
    %43 = vector.load %arg5[%c2_43, %c0_44, %c0_45] : memref<3x8x8xf32, #tpu.memory_space<vmem>>, vector<1x8x8xf32>
    %44 = vector.shape_cast %43 : vector<1x8x8xf32> to vector<8x8xf32>
    %cst_46 = arith.constant dense<0.000000e+00> : vector<8x128xf32>
    %45 = tpu.matmul %44, %29, %cst_46 {dimension_numbers = #tpu.dot_dimension_numbers<[1], [0], [0], [1], [0, 0, 1, 1], [], []>} : vector<8x8xf32>, vector<8x128xf32>, vector<8x128xf32> -> vector<8x128xf32>
    %c2_47 = arith.constant 2 : index
    %c0_48 = arith.constant 0 : index
    %c0_49 = arith.constant 0 : index
    %46 = vector.load %arg6[%c2_47, %c0_48, %c0_49] : memref<3x128x128xf32, #tpu.memory_space<vmem>>, vector<1x128x128xf32>
    %47 = vector.shape_cast %46 : vector<1x128x128xf32> to vector<128x128xf32>
    %cst_50 = arith.constant dense<0.000000e+00> : vector<8x128xf32>
    %48 = tpu.matmul %45, %47, %cst_50 {dimension_numbers = #tpu.dot_dimension_numbers<[1], [0], [0], [1], [0, 0, 1, 1], [], []>} : vector<8x128xf32>, vector<128x128xf32>, vector<8x128xf32> -> vector<8x128xf32>
    %49 = arith.addf %42, %48 : vector<8x128xf32>
    %c0_51 = arith.constant 0 : index
    %c0_52 = arith.constant 0 : index
    %50 = vector.load %arg7[%c0_51, %c0_52] : memref<1x128xf32, #tpu.memory_space<vmem>>, vector<1x128xf32>
    %51 = vector.broadcast %50 : vector<1x128xf32> to vector<8x128xf32>
    %52 = arith.addf %49, %51 : vector<8x128xf32>
    %cst_53 = arith.constant 0.000000e+00 : f32
    %53 = vector.broadcast %cst_53 : f32 to vector<8x128xf32>
    %54 = arith.cmpf ogt, %52, %53 : vector<8x128xf32>
    %cst_54 = arith.constant 2.000000e-01 : f32
    %55 = vector.broadcast %cst_54 : f32 to vector<8x128xf32>
    %56 = arith.mulf %55, %52 : vector<8x128xf32>
    %57 = arith.select %54, %52, %56 : vector<8x128xi1>, vector<8x128xf32>
    %c0_55 = arith.constant 0 : index
    %c0_56 = arith.constant 0 : index
    %c0_57 = arith.constant 0 : index
    %58 = vector.load %arg8[%c0_55, %c0_56, %c0_57] : memref<3x8x8xf32, #tpu.memory_space<vmem>>, vector<1x8x8xf32>
    %59 = vector.shape_cast %58 : vector<1x8x8xf32> to vector<8x8xf32>
    %cst_58 = arith.constant dense<0.000000e+00> : vector<8x128xf32>
    %60 = tpu.matmul %59, %57, %cst_58 {dimension_numbers = #tpu.dot_dimension_numbers<[1], [0], [0], [1], [0, 0, 1, 1], [], []>} : vector<8x8xf32>, vector<8x128xf32>, vector<8x128xf32> -> vector<8x128xf32>
    %c0_59 = arith.constant 0 : index
    %c0_60 = arith.constant 0 : index
    %c0_61 = arith.constant 0 : index
    %61 = vector.load %arg9[%c0_59, %c0_60, %c0_61] : memref<3x128x128xf32, #tpu.memory_space<vmem>>, vector<1x128x128xf32>
    %62 = vector.shape_cast %61 : vector<1x128x128xf32> to vector<128x128xf32>
    %cst_62 = arith.constant dense<0.000000e+00> : vector<8x128xf32>
    %63 = tpu.matmul %60, %62, %cst_62 {dimension_numbers = #tpu.dot_dimension_numbers<[1], [0], [0], [1], [0, 0, 1, 1], [], []>} : vector<8x128xf32>, vector<128x128xf32>, vector<8x128xf32> -> vector<8x128xf32>
    %c1_63 = arith.constant 1 : index
    %c0_64 = arith.constant 0 : index
    %c0_65 = arith.constant 0 : index
    %64 = vector.load %arg8[%c1_63, %c0_64, %c0_65] : memref<3x8x8xf32, #tpu.memory_space<vmem>>, vector<1x8x8xf32>
    %65 = vector.shape_cast %64 : vector<1x8x8xf32> to vector<8x8xf32>
    %cst_66 = arith.constant dense<0.000000e+00> : vector<8x128xf32>
    %66 = tpu.matmul %65, %57, %cst_66 {dimension_numbers = #tpu.dot_dimension_numbers<[1], [0], [0], [1], [0, 0, 1, 1], [], []>} : vector<8x8xf32>, vector<8x128xf32>, vector<8x128xf32> -> vector<8x128xf32>
    %c1_67 = arith.constant 1 : index
    %c0_68 = arith.constant 0 : index
    %c0_69 = arith.constant 0 : index
    %67 = vector.load %arg9[%c1_67, %c0_68, %c0_69] : memref<3x128x128xf32, #tpu.memory_space<vmem>>, vector<1x128x128xf32>
    %68 = vector.shape_cast %67 : vector<1x128x128xf32> to vector<128x128xf32>
    %cst_70 = arith.constant dense<0.000000e+00> : vector<8x128xf32>
    %69 = tpu.matmul %66, %68, %cst_70 {dimension_numbers = #tpu.dot_dimension_numbers<[1], [0], [0], [1], [0, 0, 1, 1], [], []>} : vector<8x128xf32>, vector<128x128xf32>, vector<8x128xf32> -> vector<8x128xf32>
    %70 = arith.addf %63, %69 : vector<8x128xf32>
    %c2_71 = arith.constant 2 : index
    %c0_72 = arith.constant 0 : index
    %c0_73 = arith.constant 0 : index
    %71 = vector.load %arg8[%c2_71, %c0_72, %c0_73] : memref<3x8x8xf32, #tpu.memory_space<vmem>>, vector<1x8x8xf32>
    %72 = vector.shape_cast %71 : vector<1x8x8xf32> to vector<8x8xf32>
    %cst_74 = arith.constant dense<0.000000e+00> : vector<8x128xf32>
    %73 = tpu.matmul %72, %57, %cst_74 {dimension_numbers = #tpu.dot_dimension_numbers<[1], [0], [0], [1], [0, 0, 1, 1], [], []>} : vector<8x8xf32>, vector<8x128xf32>, vector<8x128xf32> -> vector<8x128xf32>
    %c2_75 = arith.constant 2 : index
    %c0_76 = arith.constant 0 : index
    %c0_77 = arith.constant 0 : index
    %74 = vector.load %arg9[%c2_75, %c0_76, %c0_77] : memref<3x128x128xf32, #tpu.memory_space<vmem>>, vector<1x128x128xf32>
    %75 = vector.shape_cast %74 : vector<1x128x128xf32> to vector<128x128xf32>
    %cst_78 = arith.constant dense<0.000000e+00> : vector<8x128xf32>
    %76 = tpu.matmul %73, %75, %cst_78 {dimension_numbers = #tpu.dot_dimension_numbers<[1], [0], [0], [1], [0, 0, 1, 1], [], []>} : vector<8x128xf32>, vector<128x128xf32>, vector<8x128xf32> -> vector<8x128xf32>
    %77 = arith.addf %70, %76 : vector<8x128xf32>
    %c0_79 = arith.constant 0 : index
    %c0_80 = arith.constant 0 : index
    %78 = vector.load %arg10[%c0_79, %c0_80] : memref<1x128xf32, #tpu.memory_space<vmem>>, vector<1x128xf32>
    %79 = vector.broadcast %78 : vector<1x128xf32> to vector<8x128xf32>
    %80 = arith.addf %77, %79 : vector<8x128xf32>
    %cst_81 = arith.constant 0.000000e+00 : f32
    %81 = vector.broadcast %cst_81 : f32 to vector<8x128xf32>
    %82 = arith.cmpf ogt, %80, %81 : vector<8x128xf32>
    %cst_82 = arith.constant 2.000000e-01 : f32
    %83 = vector.broadcast %cst_82 : f32 to vector<8x128xf32>
    %84 = arith.mulf %83, %80 : vector<8x128xf32>
    %85 = arith.select %82, %80, %84 : vector<8x128xi1>, vector<8x128xf32>
    %cst_83 = arith.constant dense<0xFF800000> : vector<128xf32>
    %86 = vector.multi_reduction <maximumf>, %85, %cst_83 [0] : vector<8x128xf32> to vector<128xf32>
    %87 = vector.shape_cast %86 : vector<128xf32> to vector<1x128xf32>
    %88 = vector.shape_cast %87 : vector<1x128xf32> to vector<1x1x128xf32>
    %c0_84 = arith.constant 0 : index
    %c0_85 = arith.constant 0 : index
    %c0_86 = arith.constant 0 : index
    %89 = vector.load %arg11[%c0_84, %c0_85, %c0_86] : memref<1x1x128xf32, #tpu.memory_space<vmem>>, vector<1x1x128xf32>
    tpu.vector_store %arg11[%c0_84, %c0_85, %c0_86], %88 {strides = array<i32>} : memref<1x1x128xf32, #tpu.memory_space<vmem>>, vector<1x1x128xf32>,
    return
  }
  func.func @transform_0(%arg0: i32) -> (i32, i32, i32) {
    %c0_i32 = arith.constant 0 : i32
    %c0_i32_0 = arith.constant 0 : i32
    %c0_i32_1 = arith.constant 0 : i32
    return %arg0, %c0_i32, %c0_i32_0 : i32, i32, i32
  }
  func.func @transform_1(%arg0: i32) -> (i32, i32, i32) {
    %c0_i32 = arith.constant 0 : i32
    %c0_i32_0 = arith.constant 0 : i32
    %c0_i32_1 = arith.constant 0 : i32
    %c0_i32_2 = arith.constant 0 : i32
    return %c0_i32, %c0_i32_0, %c0_i32_1 : i32, i32, i32
  }
  func.func @transform_2(%arg0: i32) -> (i32, i32, i32) {
    %c0_i32 = arith.constant 0 : i32
    %c0_i32_0 = arith.constant 0 : i32
    %c0_i32_1 = arith.constant 0 : i32
    %c0_i32_2 = arith.constant 0 : i32
    return %c0_i32, %c0_i32_0, %c0_i32_1 : i32, i32, i32
  }
  func.func @transform_3(%arg0: i32) -> (i32, i32) {
    %c0_i32 = arith.constant 0 : i32
    %c0_i32_0 = arith.constant 0 : i32
    %c0_i32_1 = arith.constant 0 : i32
    return %c0_i32, %c0_i32_0 : i32, i32
  }
  func.func @transform_4(%arg0: i32) -> (i32, i32, i32) {
    %c0_i32 = arith.constant 0 : i32
    %c0_i32_0 = arith.constant 0 : i32
    %c0_i32_1 = arith.constant 0 : i32
    %c0_i32_2 = arith.constant 0 : i32
    return %c0_i32, %c0_i32_0, %c0_i32_1 : i32, i32, i32
  }
  func.func @transform_5(%arg0: i32) -> (i32, i32, i32) {
    %c0_i32 = arith.constant 0 : i32
    %c0_i32_0 = arith.constant 0 : i32
    %c0_i32_1 = arith.constant 0 : i32
    %c0_i32_2 = arith.constant 0 : i32
    return %c0_i32, %c0_i32_0, %c0_i32_1 : i32, i32, i32
  }
  func.func @transform_6(%arg0: i32) -> (i32, i32) {
    %c0_i32 = arith.constant 0 : i32
    %c0_i32_0 = arith.constant 0 : i32
    %c0_i32_1 = arith.constant 0 : i32
    return %c0_i32, %c0_i32_0 : i32, i32
  }
  func.func @transform_7(%arg0: i32) -> (i32, i32, i32) {
    %c0_i32 = arith.constant 0 : i32
    %c0_i32_0 = arith.constant 0 : i32
    %c0_i32_1 = arith.constant 0 : i32
    %c0_i32_2 = arith.constant 0 : i32
    return %c0_i32, %c0_i32_0, %c0_i32_1 : i32, i32, i32
  }
  func.func @transform_8(%arg0: i32) -> (i32, i32, i32) {
    %c0_i32 = arith.constant 0 : i32
    %c0_i32_0 = arith.constant 0 : i32
    %c0_i32_1 = arith.constant 0 : i32
    %c0_i32_2 = arith.constant 0 : i32
    return %c0_i32, %c0_i32_0, %c0_i32_1 : i32, i32, i32
  }
  func.func @transform_9(%arg0: i32) -> (i32, i32) {
    %c0_i32 = arith.constant 0 : i32
    %c0_i32_0 = arith.constant 0 : i32
    %c0_i32_1 = arith.constant 0 : i32
    return %c0_i32, %c0_i32_0 : i32, i32
  }
  func.func @transform_10(%arg0: i32) -> (i32, i32, i32) {
    %c0_i32 = arith.constant 0 : i32
    %c0_i32_0 = arith.constant 0 : i32
    %c0_i32_1 = arith.constant 0 : i32
    return %arg0, %c0_i32, %c0_i32_0 : i32, i32, i32
  }
}

</mosaic_0001>

<bundles_post_ra>
// kernel: _lambda_.1
= control target key start
LH: loop header
LB: loop body
LE: loop exit
PB: predicated region body
PF: predicated region fallthrough
CT: control target
= control target key end

     0   :  { %s2641_s13 = smov 0   ;;  %s3351_s0 = inlined_call_operand.vmem [shape: f32[2,16,128], index: 0, kind: input, shape index: {}]   ;;  %s3352_s1 = inlined_call_operand.vmem [shape: f32[3,8,16], index: 1, kind: input, shape index: {}]   ;;  %s3353_s2 = inlined_call_operand.vmem [shape: f32[3,128,128], index: 2, kind: input, shape index: {}]   ;;  %s3354_s3 = inlined_call_operand.vmem [shape: f32[1,128], index: 3, kind: input, shape index: {}]   ;;  %s3355_s4 = inlined_call_operand.vmem [shape: f32[3,8,8], index: 4, kind: input, shape index: {}]   ;;  %s3356_s5 = inlined_call_operand.vmem [shape: f32[3,128,128], index: 5, kind: input, shape index: {}]   ;;  %s3357_s6 = inlined_call_operand.vmem [shape: f32[1,128], index: 6, kind: input, shape index: {}]   ;;  %s3358_s7 = inlined_call_operand.vmem [shape: f32[3,8,8], index: 7, kind: input, shape index: {}]   ;;  %s3359_s8 = inlined_call_operand.vmem [shape: f32[3,128,128], index: 8, kind: input, shape index: {}]   ;;  %s3360_s9 = inlined_call_operand.vmem [shape: f32[1,128], index: 9, kind: input, shape index: {}]   ;;  %s3361_s10 = inlined_call_operand.vmem [shape: f32[2,1,128], index: 10, kind: output, shape index: {}]  }
   0x1 LB: > { %s1902_s14 = sadd.s32 4294967295, %s2582_s13   ;;  %p1906_p0 = scmp.ge.s32.totalorder %s2582_s13, 1  ;;  %s2582_s13 = sphi %s2641_s13, %s20_s13  }
   0x2   : > { %p312_p1 = scmp.lt.s32.totalorder %s2582_s13, 3 }
   0x4   : > { %p313_p2 = pnand %p1906_p0, %p312_p1 }
   0x5   : > { %p348_p3 = scmp.lt.s32.totalorder (!%p313_p2), %s1902_s14, 1 }
   0x6   : > { %316 = sbr.rel (%p313_p2) target bundleno = 1816 (0x718), region = 60 }
   0xb   : > { %v2584_v0 = vmov 0.0   ;;  %vm2585_vm0 = vmmov 0   ;;  %v448_v1 = vld [vmem:[%s3353_s2 + $0x78] sm:$0xff]  ;;  %s3363_s14 = smov (!%p348_p3, %s1902_s14), 1  ;;  %v447_v2 = vld [vmem:[%s3353_s2 + $0x70] sm:$0xff]  ;;  %v446_v3 = vld [vmem:[%s3353_s2 + $0x68] sm:$0xff] }
   0xc   : > { %2200 = vmatprep.subr.mxu0 %v2584_v0  ;;  %2204 = vmatprep.mubr.msk.f32.mxu0 %vm2585_vm0, %v2584_v0  ;;  %s2025_s19 = sshll.u32 %s3363_s14, 4  ;;  %v445_v6 = vld [vmem:[%s3353_s2 + $0x60] sm:$0xff]  ;;  %vm359_vm1 = vcmask 130048   ;;  %v444_v8 = vld [vmem:[%s3353_s2 + $0x58] sm:$0xff]  ;;  %v1910_v9 = vld [vmem:[%s3352_s1 + $0x8] sm:$0xff]  ;;  %vm856_vm3 = vcmask 64512   ;;  %s355_s27 = scalar_lea.vmem %s3361_s10, %s3363_s14 }
   0xd   : > { %2249 = vmatprep.subr.mxu1 %v2584_v0  ;;  %2281 = vmatprep.mubr.msk.f32.mxu1 %vm2585_vm0, %v2584_v0  ;;  %s352_s24 = scalar_lea.vmem %s3351_s0, %s2025_s19  ;;  %v358_v7 = vld [vmem:[%s3352_s1] sm:$0xff]  ;;  %v1927_v10 = vld [vmem:[%s3353_s2 + $0xf8] sm:$0xff]  ;;  %v443_v11 = vld [vmem:[%s3353_s2 + $0x50] sm:$0xff] }
   0xe   : > { %2250 = vmatpush3.msra.mxu1 %v448_v1  ;;  %v2671_v4 = vld [vmem:[%s352_s24 + $0x8] sm:$0xff]  ;;  %v2673_v5 = vld [vmem:[%s352_s24] sm:$0xff]  ;;  %v1926_v12 = vld [vmem:[%s3353_s2 + $0xf0] sm:$0xff] }
   0xf   : > { %2251 = vmatprep.subr.mxu1 %v2584_v0  ;;  %2201 = vmatpush3.msra.mxu0 %v2671_v4  ;;  %v442_v13 = vld [vmem:[%s3353_s2 + $0x48] sm:$0xff]  ;;  %v441_v15 = vld [vmem:[%s3353_s2 + $0x40] sm:$0xff]  ;;  %v440_v17 = vld [vmem:[%s3353_s2 + $0x38] sm:$0xff] }
  0x10   : > { %2252 = vmatpush3.msra.mxu1 %v447_v2  ;;  %2202 = vmatprep.subr.mxu0 %v2584_v0  ;;  %v1925_v14 = vld [vmem:[%s3353_s2 + $0xe8] sm:$0xff]  ;;  %v1924_v16 = vld [vmem:[%s3353_s2 + $0xe0] sm:$0xff]  ;;  %v1923_v18 = vld [vmem:[%s3353_s2 + $0xd8] sm:$0xff] }
  0x11   : > { %2253 = vmatprep.subr.mxu1 %v2584_v0  ;;  %2203 = vmatpush3.msra.mxu0 %v2673_v5  ;;  %v439_v19 = vld [vmem:[%s3353_s2 + $0x30] sm:$0xff]  ;;  %v438_v21 = vld [vmem:[%s3353_s2 + $0x28] sm:$0xff]  ;;  %v437_v23 = vld [vmem:[%s3353_s2 + $0x20] sm:$0xff] }
  0x12   : > { %2254 = vmatpush3.msra.mxu1 %v446_v3  ;;  %2205 = vmatmul.mubr.msk.f32.vlgmr.msra.gmra.mxu0 %vm359_vm1, %v358_v7  ;;  %v1922_v20 = vld [vmem:[%s3353_s2 + $0xd0] sm:$0xff]  ;;  %v1921_v22 = vld [vmem:[%s3353_s2 + $0xc8] sm:$0xff]  ;;  %v1920_v24 = vld [vmem:[%s3353_s2 + $0xc0] sm:$0xff] }
  0x13   : > { %2255 = vmatprep.subr.mxu1 %v2584_v0  ;;  %2207 = vmatprep.subr.mxu0 %v2584_v0  ;;  %v436_v25 = vld [vmem:[%s3353_s2 + $0x18] sm:$0xff]  ;;  %v435_v27 = vld [vmem:[%s3353_s2 + $0x10] sm:$0xff]  ;;  %v434_v29 = vld [vmem:[%s3353_s2 + $0x8] sm:$0xff] }
  0x14   : > { %2256 = vmatpush3.msra.mxu1 %v445_v6  ;;  %2208 = vmatpush3.msra.mxu0 %v2671_v4  ;;  %v1919_v26 = vld [vmem:[%s3353_s2 + $0xb8] sm:$0xff]  ;;  %v1918_v28 = vld [vmem:[%s3353_s2 + $0xb0] sm:$0xff]  ;;  %v1917_v30 = vld [vmem:[%s3353_s2 + $0xa8] sm:$0xff] }
  0x15   : > { %2211 = vmatprep.mubr.msk.f32.mxu0 %vm2585_vm0, %v2584_v0  ;;  %2209 = vmatprep.subr.mxu0 %v2584_v0  ;;  %v1916_v31 = vld [vmem:[%s3353_s2 + $0xa0] sm:$0xff]  ;;  %v1915_v32 = vld [vmem:[%s3353_s2 + $0x98] sm:$0xff]  ;;  %v1914_v33 = vld [vmem:[%s3353_s2 + $0x90] sm:$0xff] }
  0x16   : > { %2257 = vmatprep.subr.mxu1 %v2584_v0  ;;  %2210 = vmatpush3.msra.mxu0 %v2673_v5  ;;  %v433_v34 = vld [vmem:[%s3353_s2] sm:$0xff]  ;;  %v1913_v35 = vld [vmem:[%s3353_s2 + $0x88] sm:$0xff]  ;;  %v1945_v37 = vld [vmem:[%s3353_s2 + $0x178] sm:$0xff] }
  0x17   : > { %2258 = vmatpush3.msra.mxu1 %v444_v8  ;;  %2212 = vmatmul.mubr.msk.f32.vlgmr.msra.gmra.mxu0 %vm359_vm1, %v1910_v9  ;;  %v1912_v36 = vld [vmem:[%s3353_s2 + $0x80] sm:$0xff]  ;;  %v1944_v39 = vld [vmem:[%s3353_s2 + $0x170] sm:$0xff]  ;;  %v1943_v42 = vld [vmem:[%s3353_s2 + $0x168] sm:$0xff] }
  0x18   : > { %2214 = vmatprep.subr.mxu0 %v2584_v0  ;;  %2259 = vmatprep.subr.mxu1 %v2584_v0  ;;  %v1928_v44 = vld [vmem:[%s3352_s1 + $0x10] sm:$0xff]  ;;  %v1942_v45 = vld [vmem:[%s3353_s2 + $0x160] sm:$0xff]  ;;  %v1941_v46 = vld [vmem:[%s3353_s2 + $0x158] sm:$0xff] }
  0x19   : > { %2215 = vmatpush3.msra.mxu0 %v1927_v10  ;;  %2260 = vmatpush3.msra.mxu1 %v443_v11  ;;  %v1940_v47 = vld [vmem:[%s3353_s2 + $0x150] sm:$0xff]  ;;  %v1939_v48 = vld [vmem:[%s3353_s2 + $0x148] sm:$0xff]  ;;  %v1938_v49 = vld [vmem:[%s3353_s2 + $0x140] sm:$0xff] }
  0x1a   : > { %2216 = vmatprep.subr.mxu0 %v2584_v0  ;;  %2261 = vmatprep.subr.mxu1 %v2584_v0  ;;  %v1937_v50 = vld [vmem:[%s3353_s2 + $0x138] sm:$0xff]  ;;  %v1936_v51 = vld [vmem:[%s3353_s2 + $0x130] sm:$0xff]  ;;  %v1935_v52 = vld [vmem:[%s3353_s2 + $0x128] sm:$0xff] }
  0x1b   : > { %2217 = vmatpush3.msra.mxu0 %v1926_v12  ;;  %2262 = vmatpush3.msra.mxu1 %v442_v13  ;;  %v1934_v53 = vld [vmem:[%s3353_s2 + $0x120] sm:$0xff]  ;;  %v1933_v54 = vld [vmem:[%s3353_s2 + $0x118] sm:$0xff]  ;;  %v1932_v55 = vld [vmem:[%s3353_s2 + $0x110] sm:$0xff] }
  0x1c   : > { %2218 = vmatprep.subr.mxu0 %v2584_v0  ;;  %2263 = vmatprep.subr.mxu1 %v2584_v0  ;;  %v1931_v56 = vld [vmem:[%s3353_s2 + $0x108] sm:$0xff]  ;;  %v1930_v57 = vld [vmem:[%s3353_s2 + $0x100] sm:$0xff]  ;;  %v945_v2 = vld [vmem:[%s3356_s5 + $0x78] sm:$0xff] }
  0x1d   : > { %2219 = vmatpush3.msra.mxu0 %v1925_v14  ;;  %2264 = vmatpush3.msra.mxu1 %v441_v15  ;;  %v944_v3 = vld [vmem:[%s3356_s5 + $0x70] sm:$0xff]  ;;  %v941_v6 = vld [vmem:[%s3356_s5 + $0x58] sm:$0xff]  ;;  %v939_v8 = vld [vmem:[%s3356_s5 + $0x48] sm:$0xff] }
  0x1e   : > { %2220 = vmatprep.subr.mxu0 %v2584_v0  ;;  %2265 = vmatprep.subr.mxu1 %v2584_v0  ;;  %v940_v7 = vld [vmem:[%s3356_s5 + $0x50] sm:$0xff]  ;;  %v938_v9 = vld [vmem:[%s3356_s5 + $0x40] sm:$0xff]  ;;  %v937_v10 = vld [vmem:[%s3356_s5 + $0x38] sm:$0xff] }
  0x1f   : > { %2221 = vmatpush3.msra.mxu0 %v1924_v16  ;;  %2266 = vmatpush3.msra.mxu1 %v440_v17  ;;  %v936_v11 = vld [vmem:[%s3356_s5 + $0x30] sm:$0xff]  ;;  %v935_v12 = vld [vmem:[%s3356_s5 + $0x28] sm:$0xff]  ;;  %v934_v13 = vld [vmem:[%s3356_s5 + $0x20] sm:$0xff] }
  0x20   : > { %2222 = vmatprep.subr.mxu0 %v2584_v0  ;;  %2267 = vmatprep.subr.mxu1 %v2584_v0  ;;  %v933_v14 = vld [vmem:[%s3356_s5 + $0x18] sm:$0xff]  ;;  %v932_v15 = vld [vmem:[%s3356_s5 + $0x10] sm:$0xff]  ;;  %v931_v16 = vld [vmem:[%s3356_s5 + $0x8] sm:$0xff] }
  0x21   : > { %2223 = vmatpush3.msra.mxu0 %v1923_v18  ;;  %2268 = vmatpush3.msra.mxu1 %v439_v19  ;;  %v1946_v18 = vld [vmem:[%s3354_s3] ss:$0 sm:$0xff] }
  0x22   : > { %2224 = vmatprep.subr.mxu0 %v2584_v0  ;;  %2269 = vmatprep.subr.mxu1 %v2584_v0 }
  0x23   : > { %2225 = vmatpush3.msra.mxu0 %v1922_v20  ;;  %2270 = vmatpush3.msra.mxu1 %v438_v21 }
  0x24   : > { %2226 = vmatprep.subr.mxu0 %v2584_v0  ;;  %2271 = vmatprep.subr.mxu1 %v2584_v0 }
  0x25   : > { %2227 = vmatpush3.msra.mxu0 %v1921_v22  ;;  %2272 = vmatpush3.msra.mxu1 %v437_v23  ;;  %v855_v23 = vld [vmem:[%s3355_s4] sm:$0xff] }
  0x26   : > { %2228 = vmatprep.subr.mxu0 %v2584_v0  ;;  %2273 = vmatprep.subr.mxu1 %v2584_v0 }
  0x27   : > { %2229 = vmatpush3.msra.mxu0 %v1920_v24  ;;  %2274 = vmatpush3.msra.mxu1 %v436_v25  ;;  %v1948_v25 = vld [vmem:[%s3355_s4 + $0x8] sm:$0xff] }
  0x28   : > { %2230 = vmatprep.subr.mxu0 %v2584_v0  ;;  %2275 = vmatprep.subr.mxu1 %v2584_v0 }
  0x29   : > { %2231 = vmatpush3.msra.mxu0 %v1919_v26  ;;  %2276 = vmatpush3.msra.mxu1 %v435_v27  ;;  %v1965_v26 = vld [vmem:[%s3356_s5 + $0xf8] sm:$0xff]  ;;  %v1964_v27 = vld [vmem:[%s3356_s5 + $0xf0] sm:$0xff] }
  0x2a   : > { %2232 = vmatprep.subr.mxu0 %v2584_v0  ;;  %2277 = vmatprep.subr.mxu1 %v2584_v0 }
  0x2b   : > { %2233 = vmatpush3.msra.mxu0 %v1918_v28  ;;  %2278 = vmatpush3.msra.mxu1 %v434_v29  ;;  %v1963_v28 = vld [vmem:[%s3356_s5 + $0xe8] sm:$0xff]  ;;  %v1962_v29 = vld [vmem:[%s3356_s5 + $0xe0] sm:$0xff] }
  0x2c   : > { %2234 = vmatprep.subr.mxu0 %v2584_v0  ;;  %2279 = vmatprep.subr.mxu1 %v2584_v0 }
  0x2d   : > { %2235 = vmatpush3.msra.mxu0 %v1917_v30  ;;  %2246 = vmatprep.mubr.msk.f32.mxu0 %vm2585_vm0, %v2584_v0  ;;  %v1961_v30 = vld [vmem:[%s3356_s5 + $0xd8] sm:$0xff] }
  0x2e   : > { %2236 = vmatprep.subr.mxu0 %v2584_v0  ;;  %2280 = vmatpush3.msra.mxu1 %v433_v34  ;;  %v1957_v34 = vld [vmem:[%s3356_s5 + $0xb8] sm:$0xff] }
  0x2f   : > { %2237 = vmatpush3.msra.mxu0 %v1916_v31  ;;  %2291 = vmatprep.subr.mxu1 %v2584_v0  ;;  %v1960_v31 = vld [vmem:[%s3356_s5 + $0xd0] sm:$0xff] }
  0x30   : > { %2238 = vmatprep.subr.mxu0 %v2584_v0 }
  0x31   : > { %2239 = vmatpush3.msra.mxu0 %v1915_v32  ;;  %v1959_v32 = vld [vmem:[%s3356_s5 + $0xc8] sm:$0xff] }
  0x32   : > { %2240 = vmatprep.subr.mxu0 %v2584_v0 }
  0x33   : > { %2241 = vmatpush3.msra.mxu0 %v1914_v33  ;;  %v1958_v33 = vld [vmem:[%s3356_s5 + $0xc0] sm:$0xff] }
  0x34   : > { %2242 = vmatprep.subr.mxu0 %v2584_v0 }
  0x35   : > { %2243 = vmatpush3.msra.mxu0 %v1913_v35  ;;  %v1956_v35 = vld [vmem:[%s3356_s5 + $0xb0] sm:$0xff] }
  0x36   : > { %2244 = vmatprep.subr.mxu0 %v2584_v0 }
  0x37   : > { %2245 = vmatpush3.msra.mxu0 %v1912_v36  ;;  %v1955_v36 = vld [vmem:[%s3356_s5 + $0xa8] sm:$0xff] }
  0x38   : > { %2284 = vmatprep.subr.mxu0 %v2584_v0 }
  0xd2   : > { %v429_v38 = vpop.f32.mrf.mxu0 }
  0xd3   : > { %2282 = vmatmul.mubr.f32.vlgmr.msra.gmra.mxu1 %v429_v38  ;;  %v1953_v38 = vld [vmem:[%s3356_s5 + $0x98] sm:$0xff] }
  0xd4   : > { %v2206_v40 = vpop.f32.mrf.mxu0  ;;  %2292 = vmatpush3.msra.mxu1 %v1945_v37  ;;  %2323 = vmatprep.mubr.msk.f32.mxu1 %vm2585_vm0, %v2584_v0  ;;  %v1954_v37 = vld [vmem:[%s3356_s5 + $0xa0] sm:$0xff] }
  0xd5   : > { %2293 = vmatprep.subr.mxu1 %v2584_v0  ;;  %v930_v40 = vld [vmem:[%s3356_s5] sm:$0xff] }
  0xd6   : > { %2294 = vmatpush3.msra.mxu1 %v1944_v39  ;;  %v1952_v39 = vld [vmem:[%s3356_s5 + $0x90] sm:$0xff] }
  0xd7   : > { %v520_v41 = vpop.f32.mrf.mxu0  ;;  %2295 = vmatprep.subr.mxu1 %v2584_v0 }
  0xd8   : > { %2247 = vmatmul.mubr.f32.vlgmr.msra.gmra.mxu0 %v520_v41  ;;  %2296 = vmatpush3.msra.mxu1 %v1943_v42  ;;  %v1951_v41 = vld [vmem:[%s3356_s5 + $0x88] sm:$0xff]  ;;  %v1950_v42 = vld [vmem:[%s3356_s5 + $0x80] sm:$0xff] }
  0xd9   : > { %v2213_v43 = vpop.f32.mrf.mxu0  ;;  %2285 = vmatpush3.msra.mxu0 %v2671_v4  ;;  %2288 = vmatprep.mubr.msk.f32.mxu0 %vm2585_vm0, %v2584_v0  ;;  %v943_v4 = vld [vmem:[%s3356_s5 + $0x68] sm:$0xff] }
  0xda   : > { %2286 = vmatprep.subr.mxu0 %v2584_v0  ;;  %2297 = vmatprep.subr.mxu1 %v2584_v0 }
  0xdb   : > { %2287 = vmatpush3.msra.mxu0 %v2673_v5  ;;  %2298 = vmatpush3.msra.mxu1 %v1942_v45  ;;  %v942_v5 = vld [vmem:[%s3356_s5 + $0x60] sm:$0xff] }
  0xdc   : > { %2289 = vmatmul.mubr.msk.f32.vlgmr.msra.gmra.mxu0 %vm359_vm1, %v1928_v44  ;;  %2299 = vmatprep.subr.mxu1 %v2584_v0 }
  0xdd   : > { %2326 = vmatprep.subr.mxu0 %v2584_v0  ;;  %2300 = vmatpush3.msra.mxu1 %v1941_v46 }
  0xde   : > { %2328 = vmatprep.mubr.msk.f32.mxu0 %vm2585_vm0, %v2584_v0  ;;  %2301 = vmatprep.subr.mxu1 %v2584_v0 }
  0xdf   : > { %2302 = vmatpush3.msra.mxu1 %v1940_v47  ;;  %v1966_v47 = vld [vmem:[%s3355_s4 + $0x10] sm:$0xff] }
  0xe0   : > { %2303 = vmatprep.subr.mxu1 %v2584_v0 }
  0xe1   : > { %2304 = vmatpush3.msra.mxu1 %v1939_v48  ;;  %v1983_v48 = vld [vmem:[%s3356_s5 + $0x178] sm:$0xff] }
  0xe2   : > { %2305 = vmatprep.subr.mxu1 %v2584_v0 }
  0xe3   : > { %2306 = vmatpush3.msra.mxu1 %v1938_v49  ;;  %v1982_v49 = vld [vmem:[%s3356_s5 + $0x170] sm:$0xff] }
  0xe4   : > { %2307 = vmatprep.subr.mxu1 %v2584_v0 }
  0xe5   : > { %2308 = vmatpush3.msra.mxu1 %v1937_v50  ;;  %v1981_v50 = vld [vmem:[%s3356_s5 + $0x168] sm:$0xff] }
  0xe6   : > { %2309 = vmatprep.subr.mxu1 %v2584_v0 }
  0xe7   : > { %2310 = vmatpush3.msra.mxu1 %v1936_v51  ;;  %v1980_v51 = vld [vmem:[%s3356_s5 + $0x160] sm:$0xff] }
  0xe8   : > { %2311 = vmatprep.subr.mxu1 %v2584_v0 }
  0xe9   : > { %2312 = vmatpush3.msra.mxu1 %v1935_v52  ;;  %v1979_v52 = vld [vmem:[%s3356_s5 + $0x158] sm:$0xff] }
  0xea   : > { %2313 = vmatprep.subr.mxu1 %v2584_v0 }
  0xeb   : > { %2314 = vmatpush3.msra.mxu1 %v1934_v53  ;;  %v1978_v53 = vld [vmem:[%s3356_s5 + $0x150] sm:$0xff] }
  0xec   : > { %2315 = vmatprep.subr.mxu1 %v2584_v0 }
  0xed   : > { %2316 = vmatpush3.msra.mxu1 %v1933_v54  ;;  %v1977_v54 = vld [vmem:[%s3356_s5 + $0x148] sm:$0xff] }
  0xee   : > { %2317 = vmatprep.subr.mxu1 %v2584_v0 }
  0xef   : > { %2318 = vmatpush3.msra.mxu1 %v1932_v55  ;;  %v1976_v55 = vld [vmem:[%s3356_s5 + $0x140] sm:$0xff] }
  0xf0   : > { %2319 = vmatprep.subr.mxu1 %v2584_v0 }
  0xf1   : > { %2320 = vmatpush3.msra.mxu1 %v1931_v56  ;;  %v1975_v56 = vld [vmem:[%s3356_s5 + $0x138] sm:$0xff] }
  0xf2   : > { %2321 = vmatprep.subr.mxu1 %v2584_v0 }
  0xf3   : > { %2322 = vmatpush3.msra.mxu1 %v1930_v57  ;;  %v1974_v57 = vld [vmem:[%s3356_s5 + $0x130] sm:$0xff] }
  0xf4   : > { %2371 = vmatprep.subr.mxu1 %v2584_v0 }
 0x193   : > { %v677_v58 = vpop.f32.mrf.mxu1 }
 0x195   : > { %v2283_v59 = vpop.f32.mrf.mxu1 }
 0x196   : > { %v1972_v59 = vld [vmem:[%s3356_s5 + $0x120] sm:$0xff] }
 0x198   : > { %v607_v60 = vpop.f32.mrf.mxu0 }
 0x199   : > { %v678_v61 = vadd.f32 %v677_v58, %v607_v60  ;;  %v1973_v58 = vld [vmem:[%s3356_s5 + $0x128] sm:$0xff]  ;;  %v1971_v60 = vld [vmem:[%s3356_s5 + $0x118] sm:$0xff] }
 0x19a   : > { %v2248_v62 = vpop.f32.mrf.mxu0 }
 0x19b   : > { %v1969_v62 = vld [vmem:[%s3356_s5 + $0x108] sm:$0xff] }
 0x19c   : > { %v752_v63 = vpop.f32.mrf.mxu0 }
 0x19d   : > { %2324 = vmatmul.mubr.f32.vlgmr.msra.gmra.mxu1 %v752_v63  ;;  %v1968_v63 = vld [vmem:[%s3356_s5 + $0x100] sm:$0xff] }
 0x19e   : > { %v2290_v1 = vpop.f32.mrf.mxu0  ;;  %2403 = vmatprep.mubr.msk.f32.mxu1 %vm2585_vm0, %v2584_v0  ;;  %2372 = vmatpush3.msra.mxu1 %v945_v2 }
 0x19f   : > { %2373 = vmatprep.subr.mxu1 %v2584_v0 }
 0x1a0   : > { %2374 = vmatpush3.msra.mxu1 %v944_v3 }
 0x1a1   : > { %2375 = vmatprep.subr.mxu1 %v2584_v0 }
 0x1a2   : > { %2376 = vmatpush3.msra.mxu1 %v943_v4 }
 0x1a3   : > { %2377 = vmatprep.subr.mxu1 %v2584_v0 }
 0x1a4   : > { %2378 = vmatpush3.msra.mxu1 %v942_v5 }
 0x1a5   : > { %2379 = vmatprep.subr.mxu1 %v2584_v0 }
 0x1a6   : > { %2380 = vmatpush3.msra.mxu1 %v941_v6 }
 0x1a7   : > { %2381 = vmatprep.subr.mxu1 %v2584_v0 }
 0x1a8   : > { %2382 = vmatpush3.msra.mxu1 %v940_v7 }
 0x1a9   : > { %2383 = vmatprep.subr.mxu1 %v2584_v0 }
 0x1aa   : > { %2384 = vmatpush3.msra.mxu1 %v939_v8  ;;  %v2003_v8 = vld [vmem:[%s3359_s8 + $0xf8] sm:$0xff] }
 0x1ab   : > { %2385 = vmatprep.subr.mxu1 %v2584_v0 }
 0x1ac   : > { %2386 = vmatpush3.msra.mxu1 %v938_v9  ;;  %v2002_v9 = vld [vmem:[%s3359_s8 + $0xf0] sm:$0xff] }
 0x1ad   : > { %2387 = vmatprep.subr.mxu1 %v2584_v0 }
 0x1ae   : > { %2388 = vmatpush3.msra.mxu1 %v937_v10  ;;  %v2001_v10 = vld [vmem:[%s3359_s8 + $0xe8] sm:$0xff] }
 0x1af   : > { %2389 = vmatprep.subr.mxu1 %v2584_v0 }
 0x1b0   : > { %2390 = vmatpush3.msra.mxu1 %v936_v11  ;;  %v2000_v11 = vld [vmem:[%s3359_s8 + $0xe0] sm:$0xff] }
 0x1b1   : > { %2391 = vmatprep.subr.mxu1 %v2584_v0 }
 0x1b2   : > { %2392 = vmatpush3.msra.mxu1 %v935_v12  ;;  %v1999_v12 = vld [vmem:[%s3359_s8 + $0xd8] sm:$0xff] }
 0x1b3   : > { %2393 = vmatprep.subr.mxu1 %v2584_v0 }
 0x1b4   : > { %2394 = vmatpush3.msra.mxu1 %v934_v13  ;;  %v1998_v13 = vld [vmem:[%s3359_s8 + $0xd0] sm:$0xff] }
 0x1b5   : > { %2395 = vmatprep.subr.mxu1 %v2584_v0 }
 0x1b6   : > { %2396 = vmatpush3.msra.mxu1 %v933_v14  ;;  %v1997_v14 = vld [vmem:[%s3359_s8 + $0xc8] sm:$0xff] }
 0x1b7   : > { %2397 = vmatprep.subr.mxu1 %v2584_v0 }
 0x1b8   : > { %2398 = vmatpush3.msra.mxu1 %v932_v15  ;;  %v1996_v15 = vld [vmem:[%s3359_s8 + $0xc0] sm:$0xff] }
 0x1b9   : > { %2399 = vmatprep.subr.mxu1 %v2584_v0 }
 0x1ba   : > { %2400 = vmatpush3.msra.mxu1 %v931_v16  ;;  %v1995_v16 = vld [vmem:[%s3359_s8 + $0xb8] sm:$0xff] }
 0x1bb   : > { %2401 = vmatprep.subr.mxu1 %v2584_v0 }
 0x1bc   : > { %2402 = vmatpush3.msra.mxu1 %v930_v40  ;;  %v1432_v40 = vld [vmem:[%s3359_s8 + $0x30] sm:$0xff] }
 0x1bd   : > { %2456 = vmatprep.subr.mxu1 %v2584_v0 }
 0x25d   : > { %v839_v17 = vpop.f32.mrf.mxu1 }
 0x25e   : > { %v843_v19 = vadd.f32 %v839_v17, %v678_v61  ;;  %v1970_v61 = vld [vmem:[%s3356_s5 + $0x110] sm:$0xff] }
 0x25f   : > { %v2325_v20 = vpop.f32.mrf.mxu1  ;;  %v1994_v17 = vld [vmem:[%s3359_s8 + $0xb0] sm:$0xff] }
 0x260   : > { %v851_v21 = vadd.f32 %v1946_v18, %v843_v19  ;;  %v1993_v18 = vld [vmem:[%s3359_s8 + $0xa8] sm:$0xff]  ;;  %v1992_v19 = vld [vmem:[%s3359_s8 + $0xa0] sm:$0xff]  ;;  %v1991_v20 = vld [vmem:[%s3359_s8 + $0x98] sm:$0xff] }
 0x262   : > { %v853_v22 = vmul.f32 0.2, %v851_v21  ;;  %vm852_vm2 = vcmp.gt.f32.partialorder %v851_v21, 0.0 }
 0x264   : > { %v2959_v24 = vsel %vm852_vm2, %v851_v21, %v853_v22  ;;  %v1990_v21 = vld [vmem:[%s3359_s8 + $0x90] sm:$0xff] }
 0x265   : > { %2327 = vmatpush3.msra.mxu0 %v2959_v24 }
 0x266   : > { %2329 = vmatmul.mubr.msk.f32.vlgmr.msra.gmra.mxu0 %vm856_vm3, %v855_v23  ;;  %2331 = vmatprep.subr.mxu0 %v2584_v0  ;;  %v1984_v23 = vld [vmem:[%s3357_s6] ss:$0 sm:$0xff] }
 0x267   : > { %2332 = vmatpush3.msra.mxu0 %v2959_v24  ;;  %2333 = vmatprep.mubr.msk.f32.mxu0 %vm2585_vm0, %v2584_v0 }
 0x268   : > { %2336 = vmatprep.subr.mxu0 %v2584_v0 }
 0x26a   : > { %2334 = vmatmul.mubr.msk.f32.vlgmr.msra.gmra.mxu0 %vm856_vm3, %v1948_v25 }
 0x26b   : > { %2337 = vmatpush3.msra.mxu0 %v1965_v26  ;;  %2368 = vmatprep.mubr.msk.f32.mxu0 %vm2585_vm0, %v2584_v0 }
 0x26c   : > { %2338 = vmatprep.subr.mxu0 %v2584_v0 }
 0x26d   : > { %2339 = vmatpush3.msra.mxu0 %v1964_v27 }
 0x26e   : > { %2340 = vmatprep.subr.mxu0 %v2584_v0 }
 0x26f   : > { %2341 = vmatpush3.msra.mxu0 %v1963_v28  ;;  %v1352_v28 = vld [vmem:[%s3358_s7] sm:$0xff] }
 0x270   : > { %2342 = vmatprep.subr.mxu0 %v2584_v0 }
 0x271   : > { %2343 = vmatpush3.msra.mxu0 %v1962_v29 }
 0x272   : > { %2344 = vmatprep.subr.mxu0 %v2584_v0 }
 0x273   : > { %2345 = vmatpush3.msra.mxu0 %v1961_v30  ;;  %v1986_v30 = vld [vmem:[%s3358_s7 + $0x8] sm:$0xff] }
 0x274   : > { %2346 = vmatprep.subr.mxu0 %v2584_v0 }
 0x275   : > { %2347 = vmatpush3.msra.mxu0 %v1960_v31  ;;  %v1441_v31 = vld [vmem:[%s3359_s8 + $0x78] sm:$0xff] }
 0x276   : > { %2348 = vmatprep.subr.mxu0 %v2584_v0 }
 0x277   : > { %2349 = vmatpush3.msra.mxu0 %v1959_v32  ;;  %v1440_v32 = vld [vmem:[%s3359_s8 + $0x70] sm:$0xff] }
 0x278   : > { %2350 = vmatprep.subr.mxu0 %v2584_v0 }
 0x279   : > { %2351 = vmatpush3.msra.mxu0 %v1958_v33  ;;  %v1439_v33 = vld [vmem:[%s3359_s8 + $0x68] sm:$0xff] }
 0x27a   : > { %2352 = vmatprep.subr.mxu0 %v2584_v0 }
 0x27b   : > { %2353 = vmatpush3.msra.mxu0 %v1957_v34  ;;  %v1438_v34 = vld [vmem:[%s3359_s8 + $0x60] sm:$0xff] }
 0x27c   : > { %2354 = vmatprep.subr.mxu0 %v2584_v0 }
 0x27d   : > { %2355 = vmatpush3.msra.mxu0 %v1956_v35  ;;  %v1437_v35 = vld [vmem:[%s3359_s8 + $0x58] sm:$0xff] }
 0x27e   : > { %2356 = vmatprep.subr.mxu0 %v2584_v0 }
 0x27f   : > { %2357 = vmatpush3.msra.mxu0 %v1955_v36  ;;  %v1436_v36 = vld [vmem:[%s3359_s8 + $0x50] sm:$0xff] }
 0x280   : > { %2358 = vmatprep.subr.mxu0 %v2584_v0 }
 0x281   : > { %2359 = vmatpush3.msra.mxu0 %v1954_v37  ;;  %v1435_v37 = vld [vmem:[%s3359_s8 + $0x48] sm:$0xff] }
 0x282   : > { %2360 = vmatprep.subr.mxu0 %v2584_v0 }
 0x283   : > { %2361 = vmatpush3.msra.mxu0 %v1953_v38  ;;  %v1434_v38 = vld [vmem:[%s3359_s8 + $0x40] sm:$0xff] }
 0x284   : > { %2362 = vmatprep.subr.mxu0 %v2584_v0 }
 0x285   : > { %2363 = vmatpush3.msra.mxu0 %v1952_v39  ;;  %v1433_v39 = vld [vmem:[%s3359_s8 + $0x38] sm:$0xff] }
 0x286   : > { %2364 = vmatprep.subr.mxu0 %v2584_v0 }
 0x287   : > { %2365 = vmatpush3.msra.mxu0 %v1951_v41  ;;  %v1431_v41 = vld [vmem:[%s3359_s8 + $0x28] sm:$0xff] }
 0x288   : > { %2366 = vmatprep.subr.mxu0 %v2584_v0 }
 0x289   : > { %2367 = vmatpush3.msra.mxu0 %v1950_v42  ;;  %v1430_v42 = vld [vmem:[%s3359_s8 + $0x20] sm:$0xff] }
 0x28a   : > { %2406 = vmatprep.subr.mxu0 %v2584_v0 }
 0x326   : > { %v926_v43 = vpop.f32.mrf.mxu0 }
 0x327   : > { %2404 = vmatmul.mubr.f32.vlgmr.msra.gmra.mxu1 %v926_v43  ;;  %v1429_v43 = vld [vmem:[%s3359_s8 + $0x18] sm:$0xff] }
 0x328   : > { %v2330_v44 = vpop.f32.mrf.mxu0  ;;  %2488 = vmatprep.mubr.msk.f32.mxu1 %vm2585_vm0, %v2584_v0  ;;  %2457 = vmatpush3.msra.mxu1 %v2003_v8 }
 0x329   : > { %2458 = vmatprep.subr.mxu1 %v2584_v0  ;;  %v1428_v44 = vld [vmem:[%s3359_s8 + $0x10] sm:$0xff] }
 0x32a   : > { %v1017_v45 = vpop.f32.mrf.mxu0  ;;  %2459 = vmatpush3.msra.mxu1 %v2002_v9 }
 0x32b   : > { %2369 = vmatmul.mubr.f32.vlgmr.msra.gmra.mxu0 %v1017_v45  ;;  %2460 = vmatprep.subr.mxu1 %v2584_v0  ;;  %v1427_v45 = vld [vmem:[%s3359_s8 + $0x8] sm:$0xff] }
 0x32c   : > { %2407 = vmatpush3.msra.mxu0 %v2959_v24  ;;  %v2335_v46 = vpop.f32.mrf.mxu0  ;;  %2408 = vmatprep.mubr.msk.f32.mxu0 %vm2585_vm0, %v2584_v0 }
 0x32d   : > { %2411 = vmatprep.subr.mxu0 %v2584_v0  ;;  %2461 = vmatpush3.msra.mxu1 %v2001_v10  ;;  %v1989_v46 = vld [vmem:[%s3359_s8 + $0x88] sm:$0xff] }
 0x32e   : > { %2462 = vmatprep.subr.mxu1 %v2584_v0 }
 0x32f   : > { %2409 = vmatmul.mubr.msk.f32.vlgmr.msra.gmra.mxu0 %vm856_vm3, %v1966_v47  ;;  %2463 = vmatpush3.msra.mxu1 %v2000_v11  ;;  %v1426_v47 = vld [vmem:[%s3359_s8] sm:$0xff] }
 0x330   : > { %2412 = vmatpush3.msra.mxu0 %v1983_v48  ;;  %2443 = vmatprep.mubr.msk.f32.mxu0 %vm2585_vm0, %v2584_v0  ;;  %v1988_v48 = vld [vmem:[%s3359_s8 + $0x80] sm:$0xff] }
 0x331   : > { %2413 = vmatprep.subr.mxu0 %v2584_v0  ;;  %2464 = vmatprep.subr.mxu1 %v2584_v0 }
 0x332   : > { %2414 = vmatpush3.msra.mxu0 %v1982_v49  ;;  %2465 = vmatpush3.msra.mxu1 %v1999_v12 }
 0x333   : > { %2415 = vmatprep.subr.mxu0 %v2584_v0  ;;  %2466 = vmatprep.subr.mxu1 %v2584_v0 }
 0x334   : > { %2416 = vmatpush3.msra.mxu0 %v1981_v50  ;;  %2467 = vmatpush3.msra.mxu1 %v1998_v13 }
 0x335   : > { %2417 = vmatprep.subr.mxu0 %v2584_v0  ;;  %2468 = vmatprep.subr.mxu1 %v2584_v0 }
 0x336   : > { %2418 = vmatpush3.msra.mxu0 %v1980_v51  ;;  %2469 = vmatpush3.msra.mxu1 %v1997_v14 }
 0x337   : > { %2419 = vmatprep.subr.mxu0 %v2584_v0  ;;  %2470 = vmatprep.subr.mxu1 %v2584_v0 }
 0x338   : > { %2420 = vmatpush3.msra.mxu0 %v1979_v52  ;;  %2471 = vmatpush3.msra.mxu1 %v1996_v15  ;;  %v2022_v15 = vld [vmem:[%s3360_s9] ss:$0 sm:$0xff] }
 0x339   : > { %2421 = vmatprep.subr.mxu0 %v2584_v0  ;;  %2472 = vmatprep.subr.mxu1 %v2584_v0 }
 0x33a   : > { %2422 = vmatpush3.msra.mxu0 %v1978_v53  ;;  %2473 = vmatpush3.msra.mxu1 %v1995_v16  ;;  %v2004_v53 = vld [vmem:[%s3358_s7 + $0x10] sm:$0xff] }
 0x33b   : > { %2423 = vmatprep.subr.mxu0 %v2584_v0  ;;  %2474 = vmatprep.subr.mxu1 %v2584_v0 }
 0x33c   : > { %2424 = vmatpush3.msra.mxu0 %v1977_v54  ;;  %2475 = vmatpush3.msra.mxu1 %v1994_v17  ;;  %v2021_v54 = vld [vmem:[%s3359_s8 + $0x178] sm:$0xff] }
 0x33d   : > { %2425 = vmatprep.subr.mxu0 %v2584_v0  ;;  %2476 = vmatprep.subr.mxu1 %v2584_v0 }
 0x33e   : > { %2426 = vmatpush3.msra.mxu0 %v1976_v55  ;;  %2477 = vmatpush3.msra.mxu1 %v1993_v18  ;;  %v2020_v55 = vld [vmem:[%s3359_s8 + $0x170] sm:$0xff] }
 0x33f   : > { %2427 = vmatprep.subr.mxu0 %v2584_v0  ;;  %2478 = vmatprep.subr.mxu1 %v2584_v0 }
 0x340   : > { %2428 = vmatpush3.msra.mxu0 %v1975_v56  ;;  %2479 = vmatpush3.msra.mxu1 %v1992_v19  ;;  %v2019_v56 = vld [vmem:[%s3359_s8 + $0x168] sm:$0xff] }
 0x341   : > { %2429 = vmatprep.subr.mxu0 %v2584_v0  ;;  %2480 = vmatprep.subr.mxu1 %v2584_v0 }
 0x342   : > { %2430 = vmatpush3.msra.mxu0 %v1974_v57  ;;  %2481 = vmatpush3.msra.mxu1 %v1991_v20  ;;  %v2018_v57 = vld [vmem:[%s3359_s8 + $0x160] sm:$0xff] }
 0x343   : > { %2431 = vmatprep.subr.mxu0 %v2584_v0  ;;  %2482 = vmatprep.subr.mxu1 %v2584_v0 }
 0x344   : > { %2432 = vmatpush3.msra.mxu0 %v1973_v58  ;;  %2483 = vmatpush3.msra.mxu1 %v1990_v21  ;;  %v2017_v58 = vld [vmem:[%s3359_s8 + $0x158] sm:$0xff] }
 0x345   : > { %2433 = vmatprep.subr.mxu0 %v2584_v0  ;;  %2484 = vmatprep.subr.mxu1 %v2584_v0 }
 0x346   : > { %2434 = vmatpush3.msra.mxu0 %v1972_v59  ;;  %2485 = vmatpush3.msra.mxu1 %v1989_v46  ;;  %v2016_v59 = vld [vmem:[%s3359_s8 + $0x150] sm:$0xff] }
 0x347   : > { %2435 = vmatprep.subr.mxu0 %v2584_v0  ;;  %2486 = vmatprep.subr.mxu1 %v2584_v0 }
 0x348   : > { %2436 = vmatpush3.msra.mxu0 %v1971_v60  ;;  %2487 = vmatpush3.msra.mxu1 %v1988_v48  ;;  %v2015_v60 = vld [vmem:[%s3359_s8 + $0x148] sm:$0xff] }
 0x349   : > { %2437 = vmatprep.subr.mxu0 %v2584_v0  ;;  %2526 = vmatprep.subr.mxu1 %v2584_v0 }
 0x34a   : > { %2438 = vmatpush3.msra.mxu0 %v1970_v61  ;;  %v2014_v61 = vld [vmem:[%s3359_s8 + $0x140] sm:$0xff] }
 0x34b   : > { %2439 = vmatprep.subr.mxu0 %v2584_v0 }
 0x34c   : > { %2440 = vmatpush3.msra.mxu0 %v1969_v62  ;;  %v2013_v62 = vld [vmem:[%s3359_s8 + $0x138] sm:$0xff] }
 0x34d   : > { %2441 = vmatprep.subr.mxu0 %v2584_v0 }
 0x34e   : > { %2442 = vmatpush3.msra.mxu0 %v1968_v63  ;;  %v2012_v63 = vld [vmem:[%s3359_s8 + $0x130] sm:$0xff] }
 0x34f   : > { %2446 = vmatprep.subr.mxu0 %v2584_v0 }
 0x3e7   : > { %v1174_v1 = vpop.f32.mrf.mxu1 }
 0x3e9   : > { %v2405_v2 = vpop.f32.mrf.mxu1 }
 0x3ea   : > { %v2010_v2 = vld [vmem:[%s3359_s8 + $0x120] sm:$0xff] }
 0x3eb   : > { %v1104_v3 = vpop.f32.mrf.mxu0 }
 0x3ec   : > { %v1175_v4 = vadd.f32 %v1174_v1, %v1104_v3  ;;  %v2011_v1 = vld [vmem:[%s3359_s8 + $0x128] sm:$0xff]  ;;  %v2009_v3 = vld [vmem:[%s3359_s8 + $0x118] sm:$0xff] }
 0x3ed   : > { %v2370_v5 = vpop.f32.mrf.mxu0 }
 0x3ee   : > { %v2007_v5 = vld [vmem:[%s3359_s8 + $0x108] sm:$0xff] }
 0x3ef   : > { %v1249_v6 = vpop.f32.mrf.mxu0 }
 0x3f0   : > { %2444 = vmatmul.mubr.f32.vlgmr.msra.gmra.mxu0 %v1249_v6  ;;  %v2006_v6 = vld [vmem:[%s3359_s8 + $0x100] sm:$0xff] }
 0x3f1   : > { %v2410_v7 = vpop.f32.mrf.mxu0  ;;  %2448 = vmatprep.mubr.msk.f32.mxu0 %vm2585_vm0, %v2584_v0 }
 0x4b0   : > { %v1336_v22 = vpop.f32.mrf.mxu0 }
 0x4b1   : > { %v1340_v24 = vadd.f32 %v1336_v22, %v1175_v4  ;;  %v2008_v4 = vld [vmem:[%s3359_s8 + $0x110] sm:$0xff] }
 0x4b2   : > { %v2445_v25 = vpop.f32.mrf.mxu0 }
 0x4b3   : > { %v1348_v26 = vadd.f32 %v1984_v23, %v1340_v24 }
 0x4b5   : > { %v1350_v27 = vmul.f32 0.2, %v1348_v26  ;;  %vm1349_vm4 = vcmp.gt.f32.partialorder %v1348_v26, 0.0 }
 0x4b7   : > { %v3182_v29 = vsel %vm1349_vm4, %v1348_v26, %v1350_v27 }
 0x4b8   : > { %2447 = vmatpush3.msra.mxu0 %v3182_v29 }
 0x4b9   : > { %2449 = vmatmul.mubr.msk.f32.vlgmr.msra.gmra.mxu0 %vm856_vm3, %v1352_v28  ;;  %2451 = vmatprep.subr.mxu0 %v2584_v0 }
 0x4ba   : > { %2452 = vmatpush3.msra.mxu0 %v3182_v29  ;;  %2453 = vmatprep.mubr.msk.f32.mxu0 %vm2585_vm0, %v2584_v0 }
 0x4bb   : > { %2491 = vmatprep.subr.mxu0 %v2584_v0 }
 0x4bd   : > { %2454 = vmatmul.mubr.msk.f32.vlgmr.msra.gmra.mxu0 %vm856_vm3, %v1986_v30 }
 0x4be   : > { %2492 = vmatpush3.msra.mxu0 %v1441_v31  ;;  %2523 = vmatprep.mubr.msk.f32.mxu0 %vm2585_vm0, %v2584_v0 }
 0x4bf   : > { %2493 = vmatprep.subr.mxu0 %v2584_v0 }
 0x4c0   : > { %2494 = vmatpush3.msra.mxu0 %v1440_v32 }
 0x4c1   : > { %2495 = vmatprep.subr.mxu0 %v2584_v0 }
 0x4c2   : > { %2496 = vmatpush3.msra.mxu0 %v1439_v33 }
 0x4c3   : > { %2497 = vmatprep.subr.mxu0 %v2584_v0 }
 0x4c4   : > { %2498 = vmatpush3.msra.mxu0 %v1438_v34 }
 0x4c5   : > { %2499 = vmatprep.subr.mxu0 %v2584_v0 }
 0x4c6   : > { %2500 = vmatpush3.msra.mxu0 %v1437_v35 }
 0x4c7   : > { %2501 = vmatprep.subr.mxu0 %v2584_v0 }
 0x4c8   : > { %2502 = vmatpush3.msra.mxu0 %v1436_v36 }
 0x4c9   : > { %2503 = vmatprep.subr.mxu0 %v2584_v0 }
 0x4ca   : > { %2504 = vmatpush3.msra.mxu0 %v1435_v37 }
 0x4cb   : > { %2505 = vmatprep.subr.mxu0 %v2584_v0 }
 0x4cc   : > { %2506 = vmatpush3.msra.mxu0 %v1434_v38 }
 0x4cd   : > { %2507 = vmatprep.subr.mxu0 %v2584_v0 }
 0x4ce   : > { %2508 = vmatpush3.msra.mxu0 %v1433_v39 }
 0x4cf   : > { %2509 = vmatprep.subr.mxu0 %v2584_v0 }
 0x4d0   : > { %2510 = vmatpush3.msra.mxu0 %v1432_v40 }
 0x4d1   : > { %2511 = vmatprep.subr.mxu0 %v2584_v0 }
 0x4d2   : > { %2512 = vmatpush3.msra.mxu0 %v1431_v41 }
 0x4d3   : > { %2513 = vmatprep.subr.mxu0 %v2584_v0 }
 0x4d4   : > { %2514 = vmatpush3.msra.mxu0 %v1430_v42 }
 0x4d5   : > { %2515 = vmatprep.subr.mxu0 %v2584_v0 }
 0x4d6   : > { %2516 = vmatpush3.msra.mxu0 %v1429_v43 }
 0x4d7   : > { %2517 = vmatprep.subr.mxu0 %v2584_v0 }
 0x4d8   : > { %2518 = vmatpush3.msra.mxu0 %v1428_v44 }
 0x4d9   : > { %2519 = vmatprep.subr.mxu0 %v2584_v0 }
 0x4da   : > { %2520 = vmatpush3.msra.mxu0 %v1427_v45 }
 0x4db   : > { %2521 = vmatprep.subr.mxu0 %v2584_v0 }
 0x4dc   : > { %2522 = vmatpush3.msra.mxu0 %v1426_v47 }
 0x579   : > { %v1422_v49 = vpop.f32.mrf.mxu0 }
 0x57a   : > { %2524 = vmatmul.mubr.f32.vlgmr.msra.gmra.mxu0 %v1422_v49 }
 0x57b   : > { %v2450_v50 = vpop.f32.mrf.mxu0 }
 0x57d   : > { %v1513_v51 = vpop.f32.mrf.mxu0 }
 0x57e   : > { %2489 = vmatmul.mubr.f32.vlgmr.msra.gmra.mxu1 %v1513_v51 }
 0x57f   : > { %2527 = vmatpush3.msra.mxu1 %v3182_v29  ;;  %v2455_v52 = vpop.f32.mrf.mxu0  ;;  %2528 = vmatprep.mubr.msk.f32.mxu1 %vm2585_vm0, %v2584_v0 }
 0x580   : > { %2531 = vmatprep.subr.mxu1 %v2584_v0 }
 0x582   : > { %2529 = vmatmul.mubr.msk.f32.vlgmr.msra.gmra.mxu1 %vm856_vm3, %v2004_v53 }
 0x583   : > { %2532 = vmatpush3.msra.mxu1 %v2021_v54  ;;  %2563 = vmatprep.mubr.msk.f32.mxu1 %vm2585_vm0, %v2584_v0 }
 0x584   : > { %2533 = vmatprep.subr.mxu1 %v2584_v0 }
 0x585   : > { %2534 = vmatpush3.msra.mxu1 %v2020_v55 }
 0x586   : > { %2535 = vmatprep.subr.mxu1 %v2584_v0 }
 0x587   : > { %2536 = vmatpush3.msra.mxu1 %v2019_v56 }
 0x588   : > { %2537 = vmatprep.subr.mxu1 %v2584_v0 }
 0x589   : > { %2538 = vmatpush3.msra.mxu1 %v2018_v57 }
 0x58a   : > { %2539 = vmatprep.subr.mxu1 %v2584_v0 }
 0x58b   : > { %2540 = vmatpush3.msra.mxu1 %v2017_v58 }
 0x58c   : > { %2541 = vmatprep.subr.mxu1 %v2584_v0 }
 0x58d   : > { %2542 = vmatpush3.msra.mxu1 %v2016_v59 }
 0x58e   : > { %2543 = vmatprep.subr.mxu1 %v2584_v0 }
 0x58f   : > { %2544 = vmatpush3.msra.mxu1 %v2015_v60 }
 0x590   : > { %2545 = vmatprep.subr.mxu1 %v2584_v0 }
 0x591   : > { %2546 = vmatpush3.msra.mxu1 %v2014_v61 }
 0x592   : > { %2547 = vmatprep.subr.mxu1 %v2584_v0 }
 0x593   : > { %2548 = vmatpush3.msra.mxu1 %v2013_v62 }
 0x594   : > { %2549 = vmatprep.subr.mxu1 %v2584_v0 }
 0x595   : > { %2550 = vmatpush3.msra.mxu1 %v2012_v63 }
 0x596   : > { %2551 = vmatprep.subr.mxu1 %v2584_v0 }
 0x597   : > { %2552 = vmatpush3.msra.mxu1 %v2011_v1 }
 0x598   : > { %2553 = vmatprep.subr.mxu1 %v2584_v0 }
 0x599   : > { %2554 = vmatpush3.msra.mxu1 %v2010_v2 }
 0x59a   : > { %2555 = vmatprep.subr.mxu1 %v2584_v0 }
 0x59b   : > { %2556 = vmatpush3.msra.mxu1 %v2009_v3 }
 0x59c   : > { %2557 = vmatprep.subr.mxu1 %v2584_v0 }
 0x59d   : > { %2558 = vmatpush3.msra.mxu1 %v2008_v4 }
 0x59e   : > { %2559 = vmatprep.subr.mxu1 %v2584_v0 }
 0x59f   : > { %2560 = vmatpush3.msra.mxu1 %v2007_v5 }
 0x5a0   : > { %2561 = vmatprep.subr.mxu1 %v2584_v0 }
 0x5a1   : > { %2562 = vmatpush3.msra.mxu1 %v2006_v6 }
 0x63a   : > { %v1670_v7 = vpop.f32.mrf.mxu0 }
 0x63c   : > { %v2525_v8 = vpop.f32.mrf.mxu0 }
 0x63e   : > { %v1600_v9 = vpop.f32.mrf.mxu1 }
 0x63f   : > { %v1671_v10 = vadd.f32 %v1670_v7, %v1600_v9 }
 0x640   : > { %v2490_v11 = vpop.f32.mrf.mxu1 }
 0x642   : > { %v1745_v12 = vpop.f32.mrf.mxu1 }
 0x643   : > { %2564 = vmatmul.mubr.f32.vlgmr.msra.gmra.mxu1 %v1745_v12 }
 0x644   : > { %v2530_v13 = vpop.f32.mrf.mxu1 }
 0x703   : > { %v1832_v14 = vpop.f32.mrf.mxu1 }
 0x704   : > { %v1836_v0 = vadd.f32 %v1832_v14, %v1671_v10 }
 0x705   : > { %v2565_v16 = vpop.f32.mrf.mxu1 }
 0x706   : > { %v1844_v17 = vadd.f32 %v2022_v15, %v1836_v0 }
 0x708   : > { %vm1845_vm5 = vcmp.gt.f32.partialorder %v1844_v17, 0.0  ;;  %v1846_v18 = vmul.f32 0.2, %v1844_v17 }
 0x70a   : > { %v1847_v19 = vsel %vm1845_vm5, %v1844_v17, %v1846_v18 }
 0x70b   : > { %v1848_v20 = vrot.slane %v1847_v19, 4 }
 0x70d   : > { %v1849_v21 = vmax.f32 %v1847_v19, %v1848_v20 }
 0x70f   : > { %v1850_v22 = vrot.slane %v1849_v21, 2 }
 0x711   : > { %v1851_v23 = vmax.f32 %v1849_v21, %v1850_v22 }
 0x713   : > { %v1852_v24 = vrot.slane %v1851_v23, 1 }
 0x715   : > { %v1853_v25 = vmax.f32 %v1851_v23, %v1852_v24 }
 0x717   : > { %1854 = vst [vmem:[%s355_s27] sm:$0x1] %v1853_v25 }
 0x718 PF: > { %s20_s13 = sadd.s32 1, %s2582_s13  }
 0x719   : > { %p17_p4 = scmp.ge.s32.totalorder %s20_s13, 4  }
 0x71b   :  { %19 = sbr.rel (!%p17_p4) target bundleno = 1 (0x1), region = 102 }

</bundles_post_ra>
